<compile_context>
chip_gen: v7x
topology: tpu7x:2x2x1
jax: 0.10.0
libtpu: 0.0.40
codegen_flags: <defaults>
</compile_context>

<pallas_src>
import jax
import jax.numpy as jnp
from jax.experimental import pallas as pl
from jax.experimental.pallas import tpu as pltpu

DEGREE = 4
N = 256          # number of sample points for the demo run
LANES = 128
SUBLANES = 8
TILE = SUBLANES * LANES  # 1024 elements = one full f32 vreg tile


def _poly_kernel(x_ref, w_ref, b_ref, o_ref):
    # x_ref: (rows, 128) f32 in VMEM  (sublane/lane-dense slab)
    # w_ref: (DEGREE,)   f32 in SMEM  (linear weight, flattened from (1, DEGREE))
    # b_ref: (1,)        f32 in SMEM  (linear bias)
    # o_ref: (rows, 128) f32 in VMEM
    x = x_ref[...]
    # Horner's rule on  sum_{i=1..D} w[i-1] * x**i  + b
    #   = x * (w[0] + x*(w[1] + x*(... + x*w[D-1]))) + b
    acc = jnp.full_like(x, w_ref[DEGREE - 1])
    for i in range(DEGREE - 2, -1, -1):      # static unroll: degree is tiny
        acc = acc * x + w_ref[i]
    o_ref[...] = acc * x + b_ref[0]


def polynomial_model_forward(x, weight, bias):
    """x: (N,) f32; weight: (1, DEGREE) f32; bias: (1,) f32 -> (N, 1) f32."""
    n = x.shape[0]

    # Glue: pad to a whole number of (8,128) f32 vreg tiles, reshape row-major
    # into a lane-dense slab.  Element order is preserved; padding is sliced
    # off after the kernel.
    n_pad = ((n + TILE - 1) // TILE) * TILE
    x_flat = x.astype(jnp.float32)
    if n_pad != n:
        x_flat = jnp.pad(x_flat, (0, n_pad - n))
    rows = n_pad // LANES
    x_slab = x_flat.reshape(rows, LANES)

    w_flat = weight.reshape(DEGREE).astype(jnp.float32)
    b_flat = bias.reshape(1).astype(jnp.float32)

    out_slab = pl.pallas_call(
        _poly_kernel,
        out_shape=jax.ShapeDtypeStruct((rows, LANES), jnp.float32),
        in_specs=[
            pl.BlockSpec(memory_space=pltpu.MemorySpace.VMEM),
            pl.BlockSpec(memory_space=pltpu.MemorySpace.SMEM),
            pl.BlockSpec(memory_space=pltpu.MemorySpace.SMEM),
        ],
        out_specs=pl.BlockSpec(memory_space=pltpu.MemorySpace.VMEM),
    )(x_slab, w_flat, b_flat)

    # Glue: back to PyTorch (N, 1) layout, dropping padding.
    return out_slab.reshape(n_pad, 1)[:n]


def _reference(x, weight, bias):
    # Pure-JAX reference matching the PyTorch forward exactly.
    feats = jnp.stack([x ** i for i in range(1, DEGREE + 1)], axis=1)  # (N, D)
    return feats @ weight.T + bias                                      # (N, 1)


if __name__ == "__main__":
    key = jax.random.PRNGKey(0)
    kx, kw, kb = jax.random.split(key, 3)

    # Deterministic synthetic parameters (Linear(DEGREE, 1) shapes).
    weight = jax.random.normal(kw, (1, DEGREE), dtype=jnp.float32) * 0.5
    bias = jax.random.normal(kb, (1,), dtype=jnp.float32) * 0.1

    # Input samples, kept in a modest range so higher powers stay well scaled.
    x = jax.random.uniform(kx, (N,), dtype=jnp.float32, minval=-1.0, maxval=1.0)

    fwd = jax.jit(polynomial_model_forward)
    out = fwd(x, weight, bias)
    out = jax.block_until_ready(out)

    ref = _reference(x, weight, bias)
    assert out.shape == (N, 1), out.shape
    assert jnp.allclose(out, ref, atol=1e-5, rtol=1e-5), (
        float(jnp.max(jnp.abs(out - ref))))

    print("KERNEL_OK")
</pallas_src>

<mosaic_0001>
module attributes {stable_mosaic.version = 11 : i64} {
  func.func @_poly_kernel(%arg0: memref<8x128xf32, #tpu.memory_space<vmem>>, %arg1: memref<4xf32, #tpu.memory_space<smem>>, %arg2: memref<1xf32, #tpu.memory_space<smem>>, %arg3: memref<8x128xf32, #tpu.memory_space<vmem>>) attributes {dimension_semantics = [], scalar_prefetch = 0 : i64, scratch_operands = 0 : i64, tpu.core_type = #tpu.core_type<tc>} {
    %c0 = arith.constant 0 : index
    %c0_0 = arith.constant 0 : index
    %0 = vector.load %arg0[%c0, %c0_0] : memref<8x128xf32, #tpu.memory_space<vmem>>, vector<8x128xf32>
    %c3 = arith.constant 3 : index
    %1 = memref.load %arg1[%c3] : memref<4xf32, #tpu.memory_space<smem>>
    %2 = vector.broadcast %1 : f32 to vector<8x128xf32>
    %3 = arith.mulf %2, %0 : vector<8x128xf32>
    %c2 = arith.constant 2 : index
    %4 = memref.load %arg1[%c2] : memref<4xf32, #tpu.memory_space<smem>>
    %5 = vector.broadcast %4 : f32 to vector<8x128xf32>
    %6 = arith.addf %3, %5 : vector<8x128xf32>
    %7 = arith.mulf %6, %0 : vector<8x128xf32>
    %c1 = arith.constant 1 : index
    %8 = memref.load %arg1[%c1] : memref<4xf32, #tpu.memory_space<smem>>
    %9 = vector.broadcast %8 : f32 to vector<8x128xf32>
    %10 = arith.addf %7, %9 : vector<8x128xf32>
    %11 = arith.mulf %10, %0 : vector<8x128xf32>
    %c0_1 = arith.constant 0 : index
    %12 = memref.load %arg1[%c0_1] : memref<4xf32, #tpu.memory_space<smem>>
    %13 = vector.broadcast %12 : f32 to vector<8x128xf32>
    %14 = arith.addf %11, %13 : vector<8x128xf32>
    %15 = arith.mulf %14, %0 : vector<8x128xf32>
    %c0_2 = arith.constant 0 : index
    %16 = memref.load %arg2[%c0_2] : memref<1xf32, #tpu.memory_space<smem>>
    %17 = vector.broadcast %16 : f32 to vector<8x128xf32>
    %18 = arith.addf %15, %17 : vector<8x128xf32>
    %c0_3 = arith.constant 0 : index
    %c0_4 = arith.constant 0 : index
    %19 = vector.load %arg3[%c0_3, %c0_4] : memref<8x128xf32, #tpu.memory_space<vmem>>, vector<8x128xf32>
    tpu.vector_store %arg3[%c0_3, %c0_4], %18 {strides = array<i32>} : memref<8x128xf32, #tpu.memory_space<vmem>>, vector<8x128xf32>,
    return
  }
}

</mosaic_0001>

<bundles_post_ra>
// kernel: polynomial_model_forward.1
= control target key start
LH: loop header
LB: loop body
LE: loop exit
PB: predicated region body
PF: predicated region fallthrough
CT: control target
= control target key end

     0   :  { %9 = vsyncpa [#allocation4], 0  ;;  %s104_s0 = inlined_call_operand.vmem [shape: f32[8,128], index: 0, kind: input, shape index: {}]   ;;  %s105_s1 = inlined_call_operand.vmem [shape: f32[4], index: 1, kind: input, shape index: {}]   ;;  %s106_s2 = inlined_call_operand.<no memory space> [shape: f32[1], index: 2, kind: input, shape index: {}]   ;;  %s107_s3 = inlined_call_operand.vmem [shape: f32[8,128], index: 3, kind: output, shape index: {}]  }
   0x1   :  { %s18_s14 = sshll.u32 %s105_s1, 4  ;;  %s19_s14 = int_to_ptr.vmem [resolvable:$true] %s18_s14 }
   0x2   :  { %s57_s15 = scalar_lea.vmem %s19_s14, 16  ;;  %p62_p1 = scmp.lt.s32.totalorder %s19_s14, %s19_s14 }
   0x3   :  { %p58_p0 = scmp.ne.s32.totalorder %s19_s14, %s57_s15  ;;  %p63_p2 = scmp.lt.s32.totalorder %s57_s15, %s57_s15 }
   0x5   :  { %p64_p3 = por %p63_p2, %p62_p1 }
   0x7   :  { %p65_p4 = pnand %p64_p3, %p58_p0 }
   0x9   :  { %68 = shalt.err (!%p65_p4)
}
   0xa   :  { %s71_s16 = smov [#allocation3]  }
   0xb   :  { %21 = dma.vmem_to_smem %s19_s14, 16, %s71_s16, [#allocation4]  }
   0xc   :  { %69 = dma.done.wait [#allocation4], 16  }
   0xd   :  { %70 = vsyncadd [#allocation4], 4294967280 }
   0xe   :  { %27 = sfence }
   0xf   :  { %s53_s17 = sld [smem:[#allocation3 + $0x3]]  ;;  %s54_s18 = sld [smem:[#allocation3 + $0x2]]  ;;  %v28_v0 = vld [vmem:[%s104_s0] sm:$0xff]  ;;  %v45_v11 = vstv %s106_s2 }
  0x10   :  { %s55_s19 = sld [smem:[#allocation3 + $0x1]]  ;;  %s40_s1 = sld [smem:[#allocation3]] }
  0x15   :  { %v30_v1 = vstv %s53_s17  ;;  %v33_v2 = vstv %s54_s18 }
  0x16   :  { %v31_v3 = vmul.f32 %v30_v1, %v28_v0  ;;  %v37_v5 = vstv %s55_s19  ;;  %v41_v8 = vstv %s40_s1 }
  0x18   :  { %v34_v4 = vadd.f32 %v33_v2, %v31_v3 }
  0x1a   :  { %v35_v6 = vmul.f32 %v34_v4, %v28_v0 }
  0x1c   :  { %v38_v7 = vadd.f32 %v37_v5, %v35_v6 }
  0x1e   :  { %v39_v9 = vmul.f32 %v38_v7, %v28_v0 }
  0x20   :  { %v42_v10 = vadd.f32 %v41_v8, %v39_v9 }
  0x22   :  { %v43_v12 = vmul.f32 %v42_v10, %v28_v0 }
  0x24   :  { %v46_v13 = vadd.f32 %v45_v11, %v43_v12 }
  0x26   :  { %47 = vst [vmem:[%s107_s3] sm:$0xff] %v46_v13 }
  0x27   :  { %52 = vsyncpa [#allocation4], 1 }

</bundles_post_ra>
